<compile_context>
chip_gen: v5e
topology: v5e:2x2
jax: 0.10.0
libtpu: 0.0.40
codegen_flags: <defaults>
</compile_context>

<pallas_src>
import math

import jax
import jax.numpy as jnp
from jax.experimental import pallas as pl
from jax.experimental.pallas import tpu as pltpu

LATENT_DIM = 48
HIDDEN_DIM = 128
HALF_DIM = HIDDEN_DIM // 2
LN_EPS = 1e-5


def _gelu_tanh(x):
    c = math.sqrt(2.0 / math.pi)
    return 0.5 * x * (1.0 + jnp.tanh(c * (x + 0.044715 * x * x * x)))


def _layer_norm(x, gamma, beta):
    mean = jnp.mean(x, axis=-1, keepdims=True)
    xc = x - mean
    var = jnp.mean(xc * xc, axis=-1, keepdims=True)
    return xc * jax.lax.rsqrt(var + LN_EPS) * gamma + beta


def decoder_kernel(z_ref, w1_ref, w2_ref, wh1_ref, wh2_ref, slab_ref, bh1_ref,
                   out_ref):
    # z_ref: (TB, 128) bf16            resident weights: bf16
    # slab_ref: (8, 128) f32           out_ref: (TB, 128) f32
    f32 = jnp.float32
    bf16 = jnp.bfloat16

    slab = slab_ref[...]                       # (8, 128) f32 -> exactly one vreg
    b1, g1, be1 = slab[0:1], slab[1:2], slab[2:3]
    b2, g2, be2 = slab[3:4], slab[4:5], slab[5:6]
    bh2 = slab[6:7]                            # head-2 biases in cols 0..7, else 0

    # Shared encoder block 1: Linear -> LayerNorm -> GELU (Dropout = identity).
    h = jnp.dot(z_ref[...], w1_ref[...], preferred_element_type=f32) + b1
    h = _gelu_tanh(_layer_norm(h, g1, be1))

    # Shared encoder block 2.
    h = jnp.dot(h.astype(bf16), w2_ref[...], preferred_element_type=f32) + b2
    shared = _gelu_tanh(_layer_norm(h, g2, be2))                     # (TB, 128)

    # Fused head layer 1: all four heads' Linear(H -> H/2) stacked -> (TB, 256).
    hh = jnp.dot(shared.astype(bf16), wh1_ref[...],
                 preferred_element_type=f32) + bh1_ref[...]
    hh = _gelu_tanh(hh)                                              # (TB, 256)

    # Fused head layer 2: block-diagonal weight padded to 128 output lanes.
    #   col 0: age raw, col 1: intensity raw, col 2: rate raw,
    #   cols 3..7: hearing-loss logits, cols 8..127: exact zeros.
    raw = jnp.dot(hh.astype(bf16), wh2_ref[...],
                  preferred_element_type=f32) + bh2                  # (TB, 128)

    lane = jax.lax.broadcasted_iota(jnp.int32, raw.shape, 1)
    is_logit = (lane >= 3) & (lane <= 7)

    # Fused sigmoid + per-lane scale/offset for lanes 0..2 (one exp push).
    sig = 1.0 / (1.0 + jnp.exp(-raw))
    scale = jnp.where(lane == 2, 90.0, 80.0)
    offset = jnp.where(lane == 2, 10.0, 20.0)
    scaled = sig * scale + offset

    # Numerically-stable softmax over the 5 logit lanes (lanes 3..7).
    neg = jnp.float32(-1e30)
    masked = jnp.where(is_logit, raw, neg)
    mx = jnp.max(masked, axis=-1, keepdims=True)                     # (TB, 1)
    e = jnp.exp(jnp.where(is_logit, raw - mx, neg))                  # 0 off-logit
    probs = e / jnp.sum(e, axis=-1, keepdims=True)                   # (TB, 128)

    # First-maximal-index argmax of the logits (== argmax of softmax probs).
    lane_f = lane.astype(f32)
    hl_cat = jnp.min(jnp.where(is_logit & (raw >= mx), lane_f - 3.0, 128.0),
                     axis=-1, keepdims=True)                         # (TB, 1)

    # Compose one lane-dense (TB, 128) output and do a single full-width store.
    #   lanes 0..2 -> scaled scalars, lanes 3..7 -> probs, lane 8 -> category.
    out = jnp.where(lane < 3, scaled, probs)
    out = jnp.where(lane == 8, hl_cat, out)
    out_ref[...] = out.astype(out_ref.dtype)


def pack_params(p, latent_pad):
    """Pack per-head weights into the fused / padded layouts the kernel expects."""
    H, hh, L = HIDDEN_DIM, HALF_DIM, LATENT_DIM
    bf16 = jnp.bfloat16

    w1 = jnp.zeros((latent_pad, H), jnp.float32).at[:L].set(p["enc1_w"]).astype(bf16)
    w2 = p["enc2_w"].astype(bf16)

    wh1 = jnp.concatenate(
        [p["age1_w"], p["intensity1_w"], p["rate1_w"], p["hl1_w"]],
        axis=1).astype(bf16)                                          # (H, 4*hh)

    wh2 = jnp.zeros((4 * hh, H), jnp.float32)                         # padded to 128 cols
    wh2 = wh2.at[0 * hh:1 * hh, 0:1].set(p["age2_w"])
    wh2 = wh2.at[1 * hh:2 * hh, 1:2].set(p["intensity2_w"])
    wh2 = wh2.at[2 * hh:3 * hh, 2:3].set(p["rate2_w"])
    wh2 = wh2.at[3 * hh:4 * hh, 3:8].set(p["hl2_w"])
    wh2 = wh2.astype(bf16)

    slab = jnp.zeros((8, H), jnp.float32)
    slab = slab.at[0].set(p["enc1_b"])
    slab = slab.at[1].set(p["ln1_g"])
    slab = slab.at[2].set(p["ln1_b"])
    slab = slab.at[3].set(p["enc2_b"])
    slab = slab.at[4].set(p["ln2_g"])
    slab = slab.at[5].set(p["ln2_b"])
    slab = slab.at[6, 0:8].set(jnp.concatenate(
        [p["age2_b"], p["intensity2_b"], p["rate2_b"], p["hl2_b"]]))

    bh1 = jnp.concatenate(
        [p["age1_b"], p["intensity1_b"], p["rate1_b"], p["hl1_b"]]
    ).reshape(1, -1).astype(jnp.float32)                              # (1, 256)

    return (w1, w2, wh1, wh2, slab, bh1)


def _choose_batch_tile(bp8):
    """Pick the batch tile. >=2 grid steps when the batch is big (v7x megacore)."""
    max_tb = 1024
    if bp8 <= 256:
        return bp8
    half = ((bp8 // 2 + 7) // 8) * 8
    return min(max_tb, half)


def static_parameter_decoder(z, params):
    """JAX/Pallas equivalent of ImprovedStaticParameterDecoder.forward (inference)."""
    B, L = z.shape
    H, hh = HIDDEN_DIM, HALF_DIM
    LP = ((L + 127) // 128) * 128                       # lane-pad the latent dim

    BP8 = ((B + 7) // 8) * 8
    TB = _choose_batch_tile(BP8)
    BP = ((BP8 + TB - 1) // TB) * TB

    # Lane/batch pad via jnp.pad (no zeros+scatter round trip), cast to bf16.
    z_p = jnp.pad(z, ((0, BP - B), (0, LP - L))).astype(jnp.bfloat16)

    w1, w2, wh1, wh2, slab, bh1 = pack_params(params, LP)

    const = lambda i: (0, 0)    # resident weights: constant block index

    out = pl.pallas_call(
        decoder_kernel,
        out_shape=jax.ShapeDtypeStruct((BP, H), jnp.float32),
        grid_spec=pltpu.PrefetchScalarGridSpec(
            num_scalar_prefetch=0,
            grid=(BP // TB,),
            in_specs=[
                pl.BlockSpec((TB, LP), lambda i: (i, 0)),   # z (streamed)
                pl.BlockSpec((LP, H), const),               # enc1 W (padded rows)
                pl.BlockSpec((H, H), const),                # enc2 W
                pl.BlockSpec((H, 4 * hh), const),           # fused head-1 W
                pl.BlockSpec((4 * hh, H), const),           # block-diag head-2 W (padded)
                pl.BlockSpec((8, H), const),                # bias/gamma/beta slab
                pl.BlockSpec((1, 4 * hh), const),           # fused head-1 bias
            ],
            out_specs=pl.BlockSpec((TB, H), lambda i: (i, 0)),
        ),
        compiler_params=pltpu.CompilerParams(
            dimension_semantics=("parallel",)),
    )(z_p, w1, w2, wh1, wh2, slab, bh1)

    out = out[:B]
    return {
        "age": out[:, 0],
        "intensity": out[:, 1],
        "stimulus_rate": out[:, 2],
        "hear_loss": out[:, 8],
        "hearing_loss_probs": out[:, 3:8],
    }


# ---------------------------------------------------------------------------
# Parameter init (mimics nn.Linear uniform init; LayerNorm affine randomized
# slightly so the test actually exercises it) and a pure-JAX reference that
# uses the same bf16 matmul operands / f32 accumulation as the kernel.
# ---------------------------------------------------------------------------
def init_params(key, latent_dim=LATENT_DIM, hidden_dim=HIDDEN_DIM):
    hh = hidden_dim // 2

    def linear(k, fan_in, fan_out):
        kw, kb = jax.random.split(k)
        bound = 1.0 / math.sqrt(fan_in)
        w = jax.random.uniform(kw, (fan_in, fan_out), jnp.float32, -bound, bound)
        b = jax.random.uniform(kb, (fan_out,), jnp.float32, -bound, bound)
        return w, b

    ks = jax.random.split(key, 14)
    p = {}
    p["enc1_w"], p["enc1_b"] = linear(ks[0], latent_dim, hidden_dim)
    p["ln1_g"] = 1.0 + 0.1 * jax.random.normal(ks[1], (hidden_dim,), jnp.float32)
    p["ln1_b"] = 0.1 * jax.random.normal(ks[2], (hidden_dim,), jnp.float32)
    p["enc2_w"], p["enc2_b"] = linear(ks[3], hidden_dim, hidden_dim)
    p["ln2_g"] = 1.0 + 0.1 * jax.random.normal(ks[4], (hidden_dim,), jnp.float32)
    p["ln2_b"] = 0.1 * jax.random.normal(ks[5], (hidden_dim,), jnp.float32)
    p["age1_w"], p["age1_b"] = linear(ks[6], hidden_dim, hh)
    p["age2_w"], p["age2_b"] = linear(ks[7], hh, 1)
    p["intensity1_w"], p["intensity1_b"] = linear(ks[8], hidden_dim, hh)
    p["intensity2_w"], p["intensity2_b"] = linear(ks[9], hh, 1)
    p["rate1_w"], p["rate1_b"] = linear(ks[10], hidden_dim, hh)
    p["rate2_w"], p["rate2_b"] = linear(ks[11], hh, 1)
    p["hl1_w"], p["hl1_b"] = linear(ks[12], hidden_dim, hh)
    p["hl2_w"], p["hl2_b"] = linear(ks[13], hh, 5)
    return p


def reference_forward(z, p):
    bf16 = jnp.bfloat16

    def mm(a, w):  # same MXU precision recipe as the kernel
        return jnp.dot(a.astype(bf16), w.astype(bf16),
                       preferred_element_type=jnp.float32)

    def ln(x, g, b):
        m = x.mean(-1, keepdims=True)
        v = ((x - m) ** 2).mean(-1, keepdims=True)
        return (x - m) * jax.lax.rsqrt(v + LN_EPS) * g + b

    def sigmoid(x):
        return 1.0 / (1.0 + jnp.exp(-x))

    h = _gelu_tanh(ln(mm(z, p["enc1_w"]) + p["enc1_b"], p["ln1_g"], p["ln1_b"]))
    shared = _gelu_tanh(ln(mm(h, p["enc2_w"]) + p["enc2_b"], p["ln2_g"], p["ln2_b"]))

    def head(prefix):
        hh = _gelu_tanh(mm(shared, p[f"{prefix}1_w"]) + p[f"{prefix}1_b"])
        return mm(hh, p[f"{prefix}2_w"]) + p[f"{prefix}2_b"]

    age = sigmoid(head("age"))[:, 0] * 80.0 + 20.0
    intensity = sigmoid(head("intensity"))[:, 0] * 80.0 + 20.0
    stimulus_rate = sigmoid(head("rate"))[:, 0] * 90.0 + 10.0
    hl_logits = head("hl")
    probs = jax.nn.softmax(hl_logits, axis=-1)
    hear_loss = jnp.argmax(hl_logits, axis=-1).astype(jnp.float32)
    return {
        "age": age,
        "intensity": intensity,
        "stimulus_rate": stimulus_rate,
        "hear_loss": hear_loss,
        "hearing_loss_probs": probs,
    }


if __name__ == "__main__":
    B = 4
    key = jax.random.PRNGKey(0)
    kp, kz = jax.random.split(key)
    params = init_params(kp)
    z = jax.random.normal(kz, (B, LATENT_DIM), jnp.float32)

    out = static_parameter_decoder(z, params)
    out = jax.block_until_ready(out)
    ref = reference_forward(z, params)

    assert out["age"].shape == (B,)
    assert out["intensity"].shape == (B,)
    assert out["stimulus_rate"].shape == (B,)
    assert out["hear_loss"].shape == (B,)
    assert out["hearing_loss_probs"].shape == (B, 5)

    for name in ("age", "intensity", "stimulus_rate"):
        assert jnp.allclose(out[name], ref[name], atol=1e-2, rtol=1e-3), name
    assert jnp.allclose(out["hearing_loss_probs"], ref["hearing_loss_probs"],
                        atol=1e-3), "hearing_loss_probs"
    assert jnp.array_equal(out["hear_loss"], ref["hear_loss"]), "hear_loss"

    print("KERNEL_OK")
</pallas_src>

<mosaic_0001>
module attributes {stable_mosaic.version = 11 : i64} {
  func.func @decoder_kernel(%arg0: i32, %arg1: memref<8x128xbf16, #tpu.memory_space<vmem>>, %arg2: memref<128x128xbf16, #tpu.memory_space<vmem>>, %arg3: memref<128x128xbf16, #tpu.memory_space<vmem>>, %arg4: memref<128x256xbf16, #tpu.memory_space<vmem>>, %arg5: memref<256x128xbf16, #tpu.memory_space<vmem>>, %arg6: memref<8x128xf32, #tpu.memory_space<vmem>>, %arg7: memref<1x256xf32, #tpu.memory_space<vmem>>, %arg8: memref<8x128xf32, #tpu.memory_space<vmem>>) attributes {dimension_semantics = [#tpu.dimension_semantics<parallel>], iteration_bounds = array<i64: 1>, scalar_prefetch = 0 : i64, scratch_operands = 0 : i64, tpu.core_type = #tpu.core_type<tc>, window_params = [{transform_indices = @transform_0, window_bounds = array<i64: 8, 128>}, {pipeline_mode = #tpu.pipeline_mode<synchronous>, transform_indices = @transform_1, window_bounds = array<i64: 128, 128>}, {pipeline_mode = #tpu.pipeline_mode<synchronous>, transform_indices = @transform_2, window_bounds = array<i64: 128, 128>}, {pipeline_mode = #tpu.pipeline_mode<synchronous>, transform_indices = @transform_3, window_bounds = array<i64: 128, 256>}, {pipeline_mode = #tpu.pipeline_mode<synchronous>, transform_indices = @transform_4, window_bounds = array<i64: 256, 128>}, {pipeline_mode = #tpu.pipeline_mode<synchronous>, transform_indices = @transform_5, window_bounds = array<i64: 8, 128>}, {pipeline_mode = #tpu.pipeline_mode<synchronous>, transform_indices = @transform_6, window_bounds = array<i64: 1, 256>}, {transform_indices = @transform_7, window_bounds = array<i64: 8, 128>}]} {
    %c0 = arith.constant 0 : index
    %c0_0 = arith.constant 0 : index
    %0 = vector.load %arg6[%c0, %c0_0] : memref<8x128xf32, #tpu.memory_space<vmem>>, vector<8x128xf32>
    %1 = vector.extract_strided_slice %0 {offsets = [0, 0], sizes = [1, 128], strides = [1, 1]} : vector<8x128xf32> to vector<1x128xf32>
    %2 = vector.extract_strided_slice %0 {offsets = [1, 0], sizes = [1, 128], strides = [1, 1]} : vector<8x128xf32> to vector<1x128xf32>
    %3 = vector.extract_strided_slice %0 {offsets = [2, 0], sizes = [1, 128], strides = [1, 1]} : vector<8x128xf32> to vector<1x128xf32>
    %4 = vector.extract_strided_slice %0 {offsets = [3, 0], sizes = [1, 128], strides = [1, 1]} : vector<8x128xf32> to vector<1x128xf32>
    %5 = vector.extract_strided_slice %0 {offsets = [4, 0], sizes = [1, 128], strides = [1, 1]} : vector<8x128xf32> to vector<1x128xf32>
    %6 = vector.extract_strided_slice %0 {offsets = [5, 0], sizes = [1, 128], strides = [1, 1]} : vector<8x128xf32> to vector<1x128xf32>
    %7 = vector.extract_strided_slice %0 {offsets = [6, 0], sizes = [1, 128], strides = [1, 1]} : vector<8x128xf32> to vector<1x128xf32>
    %c0_1 = arith.constant 0 : index
    %c0_2 = arith.constant 0 : index
    %8 = vector.load %arg1[%c0_1, %c0_2] : memref<8x128xbf16, #tpu.memory_space<vmem>>, vector<8x128xbf16>
    %c0_3 = arith.constant 0 : index
    %c0_4 = arith.constant 0 : index
    %9 = vector.load %arg2[%c0_3, %c0_4] : memref<128x128xbf16, #tpu.memory_space<vmem>>, vector<128x128xbf16>
    %cst = arith.constant dense<0.000000e+00> : vector<8x128xf32>
    %10 = tpu.matmul %8, %9, %cst {dimension_numbers = #tpu.dot_dimension_numbers<[1], [0], [0], [1], [0, 0, 1, 1], [], []>} : vector<8x128xbf16>, vector<128x128xbf16>, vector<8x128xf32> -> vector<8x128xf32>
    %11 = vector.broadcast %1 : vector<1x128xf32> to vector<8x128xf32>
    %12 = arith.addf %10, %11 : vector<8x128xf32>
    %cst_5 = arith.constant dense<0.000000e+00> : vector<8xf32>
    %13 = vector.multi_reduction <add>, %12, %cst_5 [1] : vector<8x128xf32> to vector<8xf32>
    %14 = vector.shape_cast %13 : vector<8xf32> to vector<8x1xf32>
    %cst_6 = arith.constant 1.280000e+02 : f32
    %15 = vector.broadcast %cst_6 : f32 to vector<8x1xf32>
    %16 = arith.divf %14, %15 : vector<8x1xf32>
    %17 = vector.broadcast %16 : vector<8x1xf32> to vector<8x128xf32>
    %18 = arith.subf %12, %17 : vector<8x128xf32>
    %19 = arith.mulf %18, %18 : vector<8x128xf32>
    %cst_7 = arith.constant dense<0.000000e+00> : vector<8xf32>
    %20 = vector.multi_reduction <add>, %19, %cst_7 [1] : vector<8x128xf32> to vector<8xf32>
    %21 = vector.shape_cast %20 : vector<8xf32> to vector<8x1xf32>
    %cst_8 = arith.constant 1.280000e+02 : f32
    %22 = vector.broadcast %cst_8 : f32 to vector<8x1xf32>
    %23 = arith.divf %21, %22 : vector<8x1xf32>
    %cst_9 = arith.constant 9.99999974E-6 : f32
    %24 = vector.broadcast %cst_9 : f32 to vector<8x1xf32>
    %25 = arith.addf %23, %24 : vector<8x1xf32>
    %26 = math.rsqrt %25 : vector<8x1xf32>
    %27 = vector.broadcast %26 : vector<8x1xf32> to vector<8x128xf32>
    %28 = arith.mulf %18, %27 : vector<8x128xf32>
    %29 = vector.broadcast %2 : vector<1x128xf32> to vector<8x128xf32>
    %30 = arith.mulf %28, %29 : vector<8x128xf32>
    %31 = vector.broadcast %3 : vector<1x128xf32> to vector<8x128xf32>
    %32 = arith.addf %30, %31 : vector<8x128xf32>
    %cst_10 = arith.constant 5.000000e-01 : f32
    %33 = vector.broadcast %cst_10 : f32 to vector<8x128xf32>
    %34 = arith.mulf %33, %32 : vector<8x128xf32>
    %cst_11 = arith.constant 4.471500e-02 : f32
    %35 = vector.broadcast %cst_11 : f32 to vector<8x128xf32>
    %36 = arith.mulf %35, %32 : vector<8x128xf32>
    %37 = arith.mulf %36, %32 : vector<8x128xf32>
    %38 = arith.mulf %37, %32 : vector<8x128xf32>
    %39 = arith.addf %32, %38 : vector<8x128xf32>
    %cst_12 = arith.constant 0.797884583 : f32
    %40 = vector.broadcast %cst_12 : f32 to vector<8x128xf32>
    %41 = arith.mulf %40, %39 : vector<8x128xf32>
    %42 = math.tanh %41 : vector<8x128xf32>
    %cst_13 = arith.constant 1.000000e+00 : f32
    %43 = vector.broadcast %cst_13 : f32 to vector<8x128xf32>
    %44 = arith.addf %43, %42 : vector<8x128xf32>
    %45 = arith.mulf %34, %44 : vector<8x128xf32>
    %46 = arith.truncf %45 : vector<8x128xf32> to vector<8x128xbf16>
    %c0_14 = arith.constant 0 : index
    %c0_15 = arith.constant 0 : index
    %47 = vector.load %arg3[%c0_14, %c0_15] : memref<128x128xbf16, #tpu.memory_space<vmem>>, vector<128x128xbf16>
    %cst_16 = arith.constant dense<0.000000e+00> : vector<8x128xf32>
    %48 = tpu.matmul %46, %47, %cst_16 {dimension_numbers = #tpu.dot_dimension_numbers<[1], [0], [0], [1], [0, 0, 1, 1], [], []>} : vector<8x128xbf16>, vector<128x128xbf16>, vector<8x128xf32> -> vector<8x128xf32>
    %49 = vector.broadcast %4 : vector<1x128xf32> to vector<8x128xf32>
    %50 = arith.addf %48, %49 : vector<8x128xf32>
    %cst_17 = arith.constant dense<0.000000e+00> : vector<8xf32>
    %51 = vector.multi_reduction <add>, %50, %cst_17 [1] : vector<8x128xf32> to vector<8xf32>
    %52 = vector.shape_cast %51 : vector<8xf32> to vector<8x1xf32>
    %cst_18 = arith.constant 1.280000e+02 : f32
    %53 = vector.broadcast %cst_18 : f32 to vector<8x1xf32>
    %54 = arith.divf %52, %53 : vector<8x1xf32>
    %55 = vector.broadcast %54 : vector<8x1xf32> to vector<8x128xf32>
    %56 = arith.subf %50, %55 : vector<8x128xf32>
    %57 = arith.mulf %56, %56 : vector<8x128xf32>
    %cst_19 = arith.constant dense<0.000000e+00> : vector<8xf32>
    %58 = vector.multi_reduction <add>, %57, %cst_19 [1] : vector<8x128xf32> to vector<8xf32>
    %59 = vector.shape_cast %58 : vector<8xf32> to vector<8x1xf32>
    %cst_20 = arith.constant 1.280000e+02 : f32
    %60 = vector.broadcast %cst_20 : f32 to vector<8x1xf32>
    %61 = arith.divf %59, %60 : vector<8x1xf32>
    %cst_21 = arith.constant 9.99999974E-6 : f32
    %62 = vector.broadcast %cst_21 : f32 to vector<8x1xf32>
    %63 = arith.addf %61, %62 : vector<8x1xf32>
    %64 = math.rsqrt %63 : vector<8x1xf32>
    %65 = vector.broadcast %64 : vector<8x1xf32> to vector<8x128xf32>
    %66 = arith.mulf %56, %65 : vector<8x128xf32>
    %67 = vector.broadcast %5 : vector<1x128xf32> to vector<8x128xf32>
    %68 = arith.mulf %66, %67 : vector<8x128xf32>
    %69 = vector.broadcast %6 : vector<1x128xf32> to vector<8x128xf32>
    %70 = arith.addf %68, %69 : vector<8x128xf32>
    %cst_22 = arith.constant 5.000000e-01 : f32
    %71 = vector.broadcast %cst_22 : f32 to vector<8x128xf32>
    %72 = arith.mulf %71, %70 : vector<8x128xf32>
    %cst_23 = arith.constant 4.471500e-02 : f32
    %73 = vector.broadcast %cst_23 : f32 to vector<8x128xf32>
    %74 = arith.mulf %73, %70 : vector<8x128xf32>
    %75 = arith.mulf %74, %70 : vector<8x128xf32>
    %76 = arith.mulf %75, %70 : vector<8x128xf32>
    %77 = arith.addf %70, %76 : vector<8x128xf32>
    %cst_24 = arith.constant 0.797884583 : f32
    %78 = vector.broadcast %cst_24 : f32 to vector<8x128xf32>
    %79 = arith.mulf %78, %77 : vector<8x128xf32>
    %80 = math.tanh %79 : vector<8x128xf32>
    %cst_25 = arith.constant 1.000000e+00 : f32
    %81 = vector.broadcast %cst_25 : f32 to vector<8x128xf32>
    %82 = arith.addf %81, %80 : vector<8x128xf32>
    %83 = arith.mulf %72, %82 : vector<8x128xf32>
    %84 = arith.truncf %83 : vector<8x128xf32> to vector<8x128xbf16>
    %c0_26 = arith.constant 0 : index
    %c0_27 = arith.constant 0 : index
    %85 = vector.load %arg4[%c0_26, %c0_27] : memref<128x256xbf16, #tpu.memory_space<vmem>>, vector<128x256xbf16>
    %cst_28 = arith.constant dense<0.000000e+00> : vector<8x256xf32>
    %86 = tpu.matmul %84, %85, %cst_28 {dimension_numbers = #tpu.dot_dimension_numbers<[1], [0], [0], [1], [0, 0, 1, 1], [], []>} : vector<8x128xbf16>, vector<128x256xbf16>, vector<8x256xf32> -> vector<8x256xf32>
    %c0_29 = arith.constant 0 : index
    %c0_30 = arith.constant 0 : index
    %87 = vector.load %arg7[%c0_29, %c0_30] : memref<1x256xf32, #tpu.memory_space<vmem>>, vector<1x256xf32>
    %88 = vector.broadcast %87 : vector<1x256xf32> to vector<8x256xf32>
    %89 = arith.addf %86, %88 : vector<8x256xf32>
    %cst_31 = arith.constant 5.000000e-01 : f32
    %90 = vector.broadcast %cst_31 : f32 to vector<8x256xf32>
    %91 = arith.mulf %90, %89 : vector<8x256xf32>
    %cst_32 = arith.constant 4.471500e-02 : f32
    %92 = vector.broadcast %cst_32 : f32 to vector<8x256xf32>
    %93 = arith.mulf %92, %89 : vector<8x256xf32>
    %94 = arith.mulf %93, %89 : vector<8x256xf32>
    %95 = arith.mulf %94, %89 : vector<8x256xf32>
    %96 = arith.addf %89, %95 : vector<8x256xf32>
    %cst_33 = arith.constant 0.797884583 : f32
    %97 = vector.broadcast %cst_33 : f32 to vector<8x256xf32>
    %98 = arith.mulf %97, %96 : vector<8x256xf32>
    %99 = math.tanh %98 : vector<8x256xf32>
    %cst_34 = arith.constant 1.000000e+00 : f32
    %100 = vector.broadcast %cst_34 : f32 to vector<8x256xf32>
    %101 = arith.addf %100, %99 : vector<8x256xf32>
    %102 = arith.mulf %91, %101 : vector<8x256xf32>
    %103 = arith.truncf %102 : vector<8x256xf32> to vector<8x256xbf16>
    %c0_35 = arith.constant 0 : index
    %c0_36 = arith.constant 0 : index
    %104 = vector.load %arg5[%c0_35, %c0_36] : memref<256x128xbf16, #tpu.memory_space<vmem>>, vector<256x128xbf16>
    %cst_37 = arith.constant dense<0.000000e+00> : vector<8x128xf32>
    %105 = tpu.matmul %103, %104, %cst_37 {dimension_numbers = #tpu.dot_dimension_numbers<[1], [0], [0], [1], [0, 0, 1, 1], [], []>} : vector<8x256xbf16>, vector<256x128xbf16>, vector<8x128xf32> -> vector<8x128xf32>
    %106 = vector.broadcast %7 : vector<1x128xf32> to vector<8x128xf32>
    %107 = arith.addf %105, %106 : vector<8x128xf32>
    %108 = tpu.iota {dimensions = array<i32: 1>} : vector<8x128xi32>
    %c3_i32 = arith.constant 3 : i32
    %109 = vector.broadcast %c3_i32 : i32 to vector<8x128xi32>
    %110 = arith.cmpi sge, %108, %109 : vector<8x128xi32>
    %c7_i32 = arith.constant 7 : i32
    %111 = vector.broadcast %c7_i32 : i32 to vector<8x128xi32>
    %112 = arith.cmpi sle, %108, %111 : vector<8x128xi32>
    %113 = arith.andi %110, %112 : vector<8x128xi1>
    %cst_38 = arith.constant 0.000000e+00 : f32
    %114 = vector.broadcast %cst_38 : f32 to vector<8x128xf32>
    %115 = arith.subf %114, %107 : vector<8x128xf32>
    %116 = math.exp %115 : vector<8x128xf32>
    %cst_39 = arith.constant 1.000000e+00 : f32
    %117 = vector.broadcast %cst_39 : f32 to vector<8x128xf32>
    %118 = arith.addf %117, %116 : vector<8x128xf32>
    %cst_40 = arith.constant 1.000000e+00 : f32
    %119 = vector.broadcast %cst_40 : f32 to vector<8x128xf32>
    %120 = arith.divf %119, %118 : vector<8x128xf32>
    %c2_i32 = arith.constant 2 : i32
    %121 = vector.broadcast %c2_i32 : i32 to vector<8x128xi32>
    %122 = arith.cmpi eq, %108, %121 : vector<8x128xi32>
    %cst_41 = arith.constant 9.000000e+01 : f32
    %cst_42 = arith.constant 8.000000e+01 : f32
    %123 = vector.broadcast %cst_41 : f32 to vector<8x128xf32>
    %124 = vector.broadcast %cst_42 : f32 to vector<8x128xf32>
    %125 = arith.select %122, %123, %124 : vector<8x128xi1>, vector<8x128xf32>
    %c2_i32_43 = arith.constant 2 : i32
    %126 = vector.broadcast %c2_i32_43 : i32 to vector<8x128xi32>
    %127 = arith.cmpi eq, %108, %126 : vector<8x128xi32>
    %cst_44 = arith.constant 1.000000e+01 : f32
    %cst_45 = arith.constant 2.000000e+01 : f32
    %128 = vector.broadcast %cst_44 : f32 to vector<8x128xf32>
    %129 = vector.broadcast %cst_45 : f32 to vector<8x128xf32>
    %130 = arith.select %127, %128, %129 : vector<8x128xi1>, vector<8x128xf32>
    %131 = arith.mulf %120, %125 : vector<8x128xf32>
    %132 = arith.addf %131, %130 : vector<8x128xf32>
    %cst_46 = arith.constant -1.000000e+30 : f32
    %133 = vector.broadcast %cst_46 : f32 to vector<8x128xf32>
    %134 = arith.select %113, %107, %133 : vector<8x128xi1>, vector<8x128xf32>
    %cst_47 = arith.constant dense<0xFF800000> : vector<8xf32>
    %135 = vector.multi_reduction <maximumf>, %134, %cst_47 [1] : vector<8x128xf32> to vector<8xf32>
    %136 = vector.shape_cast %135 : vector<8xf32> to vector<8x1xf32>
    %137 = vector.broadcast %136 : vector<8x1xf32> to vector<8x128xf32>
    %138 = arith.subf %107, %137 : vector<8x128xf32>
    %cst_48 = arith.constant -1.000000e+30 : f32
    %139 = vector.broadcast %cst_48 : f32 to vector<8x128xf32>
    %140 = arith.select %113, %138, %139 : vector<8x128xi1>, vector<8x128xf32>
    %141 = math.exp %140 : vector<8x128xf32>
    %cst_49 = arith.constant dense<0.000000e+00> : vector<8xf32>
    %142 = vector.multi_reduction <add>, %141, %cst_49 [1] : vector<8x128xf32> to vector<8xf32>
    %143 = vector.shape_cast %142 : vector<8xf32> to vector<8x1xf32>
    %144 = vector.broadcast %143 : vector<8x1xf32> to vector<8x128xf32>
    %145 = arith.divf %141, %144 : vector<8x128xf32>
    %146 = arith.sitofp %108 : vector<8x128xi32> to vector<8x128xf32>
    %147 = vector.broadcast %136 : vector<8x1xf32> to vector<8x128xf32>
    %148 = arith.cmpf oge, %107, %147 : vector<8x128xf32>
    %149 = arith.andi %113, %148 : vector<8x128xi1>
    %cst_50 = arith.constant 3.000000e+00 : f32
    %150 = vector.broadcast %cst_50 : f32 to vector<8x128xf32>
    %151 = arith.subf %146, %150 : vector<8x128xf32>
    %cst_51 = arith.constant 1.280000e+02 : f32
    %152 = vector.broadcast %cst_51 : f32 to vector<8x128xf32>
    %153 = arith.select %149, %151, %152 : vector<8x128xi1>, vector<8x128xf32>
    %cst_52 = arith.constant dense<0x7F800000> : vector<8xf32>
    %154 = vector.multi_reduction <minimumf>, %153, %cst_52 [1] : vector<8x128xf32> to vector<8xf32>
    %155 = vector.shape_cast %154 : vector<8xf32> to vector<8x1xf32>
    %c3_i32_53 = arith.constant 3 : i32
    %156 = vector.broadcast %c3_i32_53 : i32 to vector<8x128xi32>
    %157 = arith.cmpi slt, %108, %156 : vector<8x128xi32>
    %158 = arith.select %157, %132, %145 : vector<8x128xi1>, vector<8x128xf32>
    %c8_i32 = arith.constant 8 : i32
    %159 = vector.broadcast %c8_i32 : i32 to vector<8x128xi32>
    %160 = arith.cmpi eq, %108, %159 : vector<8x128xi32>
    %161 = vector.shape_cast %155 : vector<8x1xf32> to vector<8x1xf32>
    %162 = vector.broadcast %161 : vector<8x1xf32> to vector<8x128xf32>
    %163 = arith.select %160, %162, %158 : vector<8x128xi1>, vector<8x128xf32>
    %c0_54 = arith.constant 0 : index
    %c0_55 = arith.constant 0 : index
    %164 = vector.load %arg8[%c0_54, %c0_55] : memref<8x128xf32, #tpu.memory_space<vmem>>, vector<8x128xf32>
    tpu.vector_store %arg8[%c0_54, %c0_55], %163 {strides = array<i32>} : memref<8x128xf32, #tpu.memory_space<vmem>>, vector<8x128xf32>,
    return
  }
  func.func @transform_0(%arg0: i32) -> (i32, i32) {
    %c0_i32 = arith.constant 0 : i32
    %c0_i32_0 = arith.constant 0 : i32
    return %arg0, %c0_i32 : i32, i32
  }
  func.func @transform_1(%arg0: i32) -> (i32, i32) {
    %c0_i32 = arith.constant 0 : i32
    %c0_i32_0 = arith.constant 0 : i32
    %c0_i32_1 = arith.constant 0 : i32
    return %c0_i32, %c0_i32_0 : i32, i32
  }
  func.func @transform_2(%arg0: i32) -> (i32, i32) {
    %c0_i32 = arith.constant 0 : i32
    %c0_i32_0 = arith.constant 0 : i32
    %c0_i32_1 = arith.constant 0 : i32
    return %c0_i32, %c0_i32_0 : i32, i32
  }
  func.func @transform_3(%arg0: i32) -> (i32, i32) {
    %c0_i32 = arith.constant 0 : i32
    %c0_i32_0 = arith.constant 0 : i32
    %c0_i32_1 = arith.constant 0 : i32
    return %c0_i32, %c0_i32_0 : i32, i32
  }
  func.func @transform_4(%arg0: i32) -> (i32, i32) {
    %c0_i32 = arith.constant 0 : i32
    %c0_i32_0 = arith.constant 0 : i32
    %c0_i32_1 = arith.constant 0 : i32
    return %c0_i32, %c0_i32_0 : i32, i32
  }
  func.func @transform_5(%arg0: i32) -> (i32, i32) {
    %c0_i32 = arith.constant 0 : i32
    %c0_i32_0 = arith.constant 0 : i32
    %c0_i32_1 = arith.constant 0 : i32
    return %c0_i32, %c0_i32_0 : i32, i32
  }
  func.func @transform_6(%arg0: i32) -> (i32, i32) {
    %c0_i32 = arith.constant 0 : i32
    %c0_i32_0 = arith.constant 0 : i32
    %c0_i32_1 = arith.constant 0 : i32
    return %c0_i32, %c0_i32_0 : i32, i32
  }
  func.func @transform_7(%arg0: i32) -> (i32, i32) {
    %c0_i32 = arith.constant 0 : i32
    %c0_i32_0 = arith.constant 0 : i32
    return %arg0, %c0_i32 : i32, i32
  }
}

</mosaic_0001>

<bundles_post_ra>
// kernel: tpu_custom_call.1
= control target key start
LH: loop header
LB: loop body
LE: loop exit
PB: predicated region body
PF: predicated region fallthrough
CT: control target
= control target key end

     0   :  { %12 = vsyncpa [#allocation3], 0  ;;  %s1312_s0 = inlined_call_operand.hbm [shape: bf16[8,128], index: 0, kind: input, shape index: {}]   ;;  %s1313_s1 = inlined_call_operand.hbm [shape: bf16[128,128], index: 1, kind: input, shape index: {}]   ;;  %s1314_s2 = inlined_call_operand.hbm [shape: bf16[128,128], index: 2, kind: input, shape index: {}]   ;;  %s1315_s3 = inlined_call_operand.hbm [shape: bf16[128,256], index: 3, kind: input, shape index: {}]   ;;  %s1316_s4 = inlined_call_operand.hbm [shape: bf16[256,128], index: 4, kind: input, shape index: {}]   ;;  %s1317_s5 = inlined_call_operand.hbm [shape: f32[8,128], index: 5, kind: input, shape index: {}]   ;;  %s1318_s6 = inlined_call_operand.vmem [shape: f32[1,256], index: 6, kind: input, shape index: {}]   ;;  %s1319_s7 = inlined_call_operand.hbm [shape: f32[8,128], index: 7, kind: output, shape index: {}]  }
   0x1   :  { %13 = vsyncpa [#allocation6], 0 }
   0x2   :  { %14 = vsyncpa [#allocation9], 0 }
   0x3   :  { %15 = vsyncpa [#allocation12], 0  ;;  %s32_s26 = sshll.u32 %s1313_s1, 4  ;;  %s33_s26 = int_to_ptr.hbm [resolvable:$true] %s32_s26 }
   0x4   :  { %16 = vsyncpa [#allocation4], 0  ;;  %s1193_s27 = smov [#allocation5]   ;;  %s58_s8 = sshll.u32 %s1315_s3, 4  ;;  %s59_s8 = int_to_ptr.hbm [resolvable:$true] %s58_s8 }
   0x5   :  { %s34_s28 = sshll.u32 %s1193_s27, 4  ;;  %s1194_s9 = smov 64   ;;  %s35_s28 = int_to_ptr.vmem [resolvable:$true] %s34_s28 }
   0x6   :  { %s1195_s10 = smov 4   ;;  %s1196_s11 = smov [#allocation8]  }
   0x7   :  { %40 = dma.hbm_to_vmem [thread:$0]  %s33_s26, 1024, %s35_s28, [#allocation6], %s1194_s9, %s1194_s9, %s1195_s10  }
   0x8   :  { %s60_s12 = sshll.u32 %s1196_s11, 4  ;;  %s1197_s1 = smov 128   ;;  %s61_s12 = int_to_ptr.vmem [resolvable:$true] %s60_s12 }
   0x9   :  { %s1198_s13 = smov 8   ;;  %s22_s16 = sshll.u32 %s1312_s0, 4  ;;  %s23_s16 = int_to_ptr.hbm [resolvable:$true] %s22_s16 }
   0xa   :  { %66 = dma.hbm_to_vmem [thread:$0]  %s59_s8, 2048, %s61_s12, [#allocation9], %s1197_s1, %s1197_s1, %s1198_s13  }
   0xb   :  { %s1199_s17 = smov [#allocation2]   ;;  %s45_s20 = sshll.u32 %s1314_s2, 4  ;;  %s46_s20 = int_to_ptr.hbm [resolvable:$true] %s45_s20 }
   0xc   :  { %s24_s3 = sshll.u32 %s1199_s17, 4  ;;  %s1200_s21 = smov [#allocation7]   ;;  %s25_s3 = int_to_ptr.vmem [resolvable:$true] %s24_s3 }
   0xd   :  { %27 = dma.hbm_to_vmem [thread:$0]  %s23_s16, 64, %s25_s3, [#allocation3]  }
   0xe   :  { %s47_s22 = sshll.u32 %s1200_s21, 4  ;;  %s71_s25 = sshll.u32 %s1316_s4, 4  ;;  %s48_s22 = int_to_ptr.vmem [resolvable:$true] %s47_s22  ;;  %s72_s25 = int_to_ptr.hbm [resolvable:$true] %s71_s25 }
   0xf   :  { %53 = dma.hbm_to_vmem [thread:$0]  %s46_s20, 1024, %s48_s22, [#allocation6], %s1194_s9, %s1194_s9, %s1195_s10  }
  0x10   :  { %s85_s27 = sshll.u32 %s1317_s5, 4  ;;  %s1201_s28 = smov [#allocation10]   ;;  %s86_s27 = int_to_ptr.hbm [resolvable:$true] %s85_s27 }
  0x11   :  { %s73_s2 = sshll.u32 %s1201_s28, 4  ;;  %s1202_s29 = smov [#allocation11]   ;;  %s74_s2 = int_to_ptr.vmem [resolvable:$true] %s73_s2 }
  0x12   :  { %79 = dma.hbm_to_vmem [thread:$0]  %s72_s25, 2048, %s74_s2, [#allocation9], %s1194_s9, %s1194_s9, %s1195_s10  }
  0x13   :  { %s87_s4 = sshll.u32 %s1202_s29, 4  ;;  %s88_s4 = int_to_ptr.vmem [resolvable:$true] %s87_s4 }
  0x14   :  { %90 = dma.hbm_to_vmem [thread:$0]  %s86_s27, 128, %s88_s4, [#allocation12]  }
  0x15   :  { %1183 = dma.done.wait [#allocation3], 64  }
  0x16   :  { %1184 = vsyncadd [#allocation3], 4294967232 }
  0x17   :  { %1185 = dma.done.wait [#allocation6], 2048  }
  0x18   :  { %1186 = vsyncadd [#allocation6], 4294965248 }
  0x19   :  { %1187 = dma.done.wait [#allocation9], 4096  }
  0x1a   :  { %1188 = vsyncadd [#allocation9], 4294963200 }
  0x1b   :  { %1189 = dma.done.wait [#allocation12], 128  }
  0x1c   :  { %1190 = vsyncadd [#allocation12], 4294967168  ;;  %v938_v0 = vld [vmem:[#allocation5 + $0x38] sm:$0xff]  ;;  %v937_v1 = vld [vmem:[#allocation5 + $0x30] sm:$0xff]  ;;  %v1203_v14 = vmov 128.0   ;;  %s725_s11 = sshll.u32 %s1319_s7, 4  ;;  %s726_s11 = int_to_ptr.hbm [resolvable:$true] %s725_s11 }
  0x1d   :  { %184 = vmatpush.bf16.msra.mxu0 %v938_v0  ;;  %v936_v2 = vld [vmem:[#allocation5 + $0x28] sm:$0xff]  ;;  %v935_v3 = vld [vmem:[#allocation5 + $0x20] sm:$0xff]  ;;  %v934_v4 = vld [vmem:[#allocation5 + $0x18] sm:$0xff]  ;;  %993 = vrcp.f32 %v1203_v14 }
  0x1e   :  { %v933_v5 = vld [vmem:[#allocation5 + $0x10] sm:$0xff]  ;;  %v932_v6 = vld [vmem:[#allocation5 + $0x8] sm:$0xff]  ;;  %v931_v7 = vld [vmem:[#allocation5] sm:$0xff] }
  0x1f   :  { %v118_v8 = vld [vmem:[#allocation2] sm:$0xf]  ;;  %v1274_v9 = vld [vmem:[#allocation11] sm:$0xff]  ;;  %v945_v26 = vld [vmem:[#allocation7 + $0x30] sm:$0xff] }
  0x20   :  { %v135_v10 = vperm.slane %v1274_v9, 0  ;;  %v946_v25 = vld [vmem:[#allocation7 + $0x38] sm:$0xff]  ;;  %v944_v27 = vld [vmem:[#allocation7 + $0x28] sm:$0xff]  ;;  %v943_v28 = vld [vmem:[#allocation7 + $0x20] sm:$0xff]  ;;  %v224_v42 = vperm.slane %v1274_v9, 1  ;;  %v226_v44 = vperm.slane %v1274_v9, 2 }
  0x21   :  { %185 = vmatpush.bf16.msra.mxu0 %v937_v1  ;;  %303 = vmatpush.bf16.msra.mxu1 %v946_v25  ;;  %v942_v31 = vld [vmem:[#allocation7 + $0x18] sm:$0xff]  ;;  %v941_v33 = vld [vmem:[#allocation7 + $0x10] sm:$0xff]  ;;  %v940_v34 = vld [vmem:[#allocation7 + $0x8] sm:$0xff]  ;;  %v254_v58 = vperm.slane %v1274_v9, 3 }
  0x22   :  { %v939_v37 = vld [vmem:[#allocation7] sm:$0xff]  ;;  %v838_v25 = vld [vmem:[#allocation8 + $0x48] sm:$0xf0] }
  0x23   :  { %v994_v15 = vpop.eup %993 }
  0x24   :  { %v200_v16 = vmul.f32 128.0, %v994_v15  ;;  %vm204_vm0 = vweird.f32 %v994_v15 }
  0x25   :  { %186 = vmatpush.bf16.msra.mxu0 %v936_v2  ;;  %304 = vmatpush.bf16.msra.mxu1 %v945_v26  ;;  %v860_v2 = vld [vmem:[#allocation8 + $0x70] sm:$0xf] }
  0x26   :  { %v201_v17 = vsub.f32 1.0, %v200_v16  ;;  %v958_v16 = vld [vmem:[#allocation8 + $0x54] sm:$0xf0] }
  0x28   :  { %v202_v18 = vmul.f32 %v994_v15, %v201_v17  ;;  %v957_v17 = vld [vmem:[#allocation8 + $0x54] sm:$0xf] }
  0x29   :  { %187 = vmatpush.bf16.msra.mxu0 %v935_v3  ;;  %305 = vmatpush.bf16.msra.mxu1 %v944_v27  ;;  %v962_v3 = vld [vmem:[#allocation8 + $0x74] sm:$0xf0] }
  0x2a   :  { %v203_v19 = vadd.f32 %v994_v15, %v202_v18 }
  0x2c   :  { %v1277_v20 = vsel %vm204_vm0, %v994_v15, %v203_v19  ;;  %v844_v15 = vld [vmem:[#allocation8 + $0x50] sm:$0xf]  ;;  %v846_v19 = vld [vmem:[#allocation8 + $0x58] sm:$0xf0] }
  0x2d   :  { %188 = vmatpush.bf16.msra.mxu0 %v934_v4  ;;  %306 = vmatpush.bf16.msra.mxu1 %v943_v28  ;;  %v961_v4 = vld [vmem:[#allocation8 + $0x74] sm:$0xf]  ;;  %v845_v18 = vor.u32 %v958_v16, %v844_v15  ;;  %v828_v28 = vld [vmem:[#allocation8 + $0x30] sm:$0xf] }
  0x31   :  { %189 = vmatpush.bf16.msra.mxu0 %v933_v5  ;;  %307 = vmatpush.bf16.msra.mxu1 %v942_v31  ;;  %v861_v5 = vor.u32 %v962_v3, %v860_v2  ;;  %v830_v31 = vld [vmem:[#allocation8 + $0x38] sm:$0xf0]  ;;  %v977_v2 = vld [vmem:[#allocation10 + $0x70] sm:$0xff]  ;;  %v338_v3 = vperm.slane %v1274_v9, 5 }
  0x33   :  { %452 = vmatpush.bf16.msra.mxu2 %v861_v5 }
  0x35   :  { %190 = vmatpush.bf16.msra.mxu0 %v932_v6  ;;  %308 = vmatpush.bf16.msra.mxu1 %v941_v33  ;;  %v862_v6 = vld [vmem:[#allocation8 + $0x78] sm:$0xf0] }
  0x39   :  { %191 = vmatpush.bf16.msra.mxu0 %v931_v7  ;;  %309 = vmatpush.bf16.msra.mxu1 %v940_v34  ;;  %v865_v7 = vor.u32 %v961_v4, %v862_v6 }
  0x3b   :  { %465 = vmatpush.bf16.msra.mxu3 %v865_v7 }
  0x3c   :  { %192 = vmatmul.bf16.vlgmr.msra.gmra.mxu0 %v118_v8  ;;  %v852_v8 = vld [vmem:[#allocation8 + $0x60] sm:$0xf] }
  0x3d   :  { %310 = vmatpush.bf16.msra.mxu1 %v939_v37  ;;  %v952_v37 = vld [vmem:[#allocation8 + $0x24] sm:$0xf0] }
  0xb9   :  { %v193_v11 = vpop.f32.mrf.mxu0 }
  0xba   :  { %v194_v12 = vadd.f32 %v193_v11, %v135_v10  ;;  %v960_v10 = vld [vmem:[#allocation8 + $0x64] sm:$0xf0]  ;;  %v959_v11 = vld [vmem:[#allocation8 + $0x64] sm:$0xf] }
  0xbc   :  { %197 = vadd.xlane.f32.xlu0 %v194_v12 }
  0xc1   :  { %v195_v13 = vpop.f32.mrf.mxu0 }
  0xc2   :  { %v854_v13 = vld [vmem:[#allocation8 + $0x68] sm:$0xf0] }
  0xc3   :  { %v857_v14 = vor.u32 %v959_v11, %v854_v13 }
  0xc5   :  { %466 = vmatpush.bf16.msra.mxu3 %v857_v14 }
 0x12f   :  { %v198_v21 = vpop.xlane.xlu0 %197 }
 0x130   :  { %v206_v22 = vmul.f32 %v1277_v20, %v198_v21  ;;  %v836_v21 = vld [vmem:[#allocation8 + $0x40] sm:$0xf] }
 0x132   :  { %v207_v23 = vsub.f32 %v194_v12, %v206_v22  ;;  %v853_v12 = vor.u32 %v960_v10, %v852_v8  ;;  %v956_v22 = vld [vmem:[#allocation8 + $0x44] sm:$0xf0] }
 0x133   :  { %v837_v26 = vor.u32 %v956_v22, %v836_v21  ;;  %v975_v21 = vld [vmem:[#allocation10 + $0x60] sm:$0xff]  ;;  %v966_v22 = vld [vmem:[#allocation10 + $0x18] sm:$0xff] }
 0x134   :  { %v208_v24 = vmul.f32 %v207_v23, %v207_v23  ;;  %453 = vmatpush.bf16.msra.mxu2 %v853_v12 }
 0x136   :  { %209 = vadd.xlane.f32.xlu0 %v208_v24  ;;  %v955_v24 = vld [vmem:[#allocation8 + $0x44] sm:$0xf] }
 0x137   :  { %v841_v27 = vor.u32 %v955_v24, %v838_v25  ;;  %v965_v24 = vld [vmem:[#allocation10 + $0x10] sm:$0xff] }
 0x138   :  { %454 = vmatpush.bf16.msra.mxu2 %v845_v18  ;;  %v968_v18 = vld [vmem:[#allocation10 + $0x28] sm:$0xff]  ;;  %v973_v25 = vld [vmem:[#allocation10 + $0x50] sm:$0xff] }
 0x13c   :  { %455 = vmatpush.bf16.msra.mxu2 %v837_v26  ;;  %v964_v26 = vld [vmem:[#allocation10 + $0x8] sm:$0xff] }
 0x1a9   :  { %v210_v29 = vpop.xlane.xlu0 %209 }
 0x1aa   :  { %v211_v30 = vmul.f32 %v210_v29, %v1277_v20  ;;  %v954_v29 = vld [vmem:[#allocation8 + $0x34] sm:$0xf0] }
 0x1ab   :  { %v829_v34 = vor.u32 %v954_v29, %v828_v28  ;;  %v963_v28 = vld [vmem:[#allocation10] sm:$0xff] }
 0x1ac   :  { %v212_v32 = vadd.f32 1e-05, %v211_v30  ;;  %v953_v30 = vld [vmem:[#allocation8 + $0x34] sm:$0xf]  ;;  %v971_v29 = vld [vmem:[#allocation10 + $0x40] sm:$0xff] }
 0x1ad   :  { %456 = vmatpush.bf16.msra.mxu2 %v829_v34 }
 0x1ae   :  { %995 = vrsqrt.f32 %v212_v32  ;;  %vm219_vm2 = vweird.f32 %v212_v32 }
 0x1b4   :  { %v996_v35 = vpop.eup %995 }
 0x1b5   :  { %v214_v36 = vmul.f32 %v996_v35, %v212_v32  ;;  %vm220_vm1 = vweird.f32 %v996_v35 }
 0x1b6   :  { %vm221_vm3 = vmor %vm219_vm2, %vm220_vm1 }
 0x1b7   :  { %v215_v38 = vmul.f32 %v996_v35, %v214_v36  ;;  %v820_v36 = vld [vmem:[#allocation8 + $0x20] sm:$0xf] }
 0x1b9   :  { %v216_v39 = vmul.f32 0.5, %v215_v38 }
 0x1bb   :  { %v217_v40 = vsub.f32 1.5, %v216_v39  ;;  %v951_v39 = vld [vmem:[#allocation8 + $0x24] sm:$0xf] }
 0x1bd   :  { %v218_v41 = vmul.f32 %v996_v35, %v217_v40  ;;  %v822_v40 = vld [vmem:[#allocation8 + $0x28] sm:$0xf0] }
 0x1bf   :  { %v222_v43 = vsel %vm221_vm3, %v996_v35, %v218_v41  ;;  %v833_v35 = vor.u32 %v953_v30, %v830_v31  ;;  %v821_v41 = vor.u32 %v952_v37, %v820_v36  ;;  %v366_v30 = vld [vmem:[%s1318_s6] sm:$0x3]  ;;  %s1206_s6 = smov [#allocation13]  }
 0x1c0   :  { %v223_v45 = vmul.f32 %v222_v43, %v207_v23  ;;  %v849_v23 = vor.u32 %v957_v17, %v846_v19  ;;  %v812_v43 = vld [vmem:[#allocation8 + $0x10] sm:$0xf]  ;;  %v976_v19 = vld [vmem:[#allocation10 + $0x68] sm:$0xff]  ;;  %v368_v31 = vperm.slane %v366_v30, 0  ;;  %s723_s8 = sshll.u32 %s1206_s6, 4  ;;  %s724_s8 = int_to_ptr.vmem [resolvable:$true] %s723_s8 }
 0x1c1   :  { %457 = vmatpush.bf16.msra.mxu2 %v821_v41 }
 0x1c2   :  { %v225_v46 = vmul.f32 %v224_v42, %v223_v45  ;;  %467 = vmatpush.bf16.msra.mxu3 %v849_v23  ;;  %v825_v42 = vor.u32 %v951_v39, %v822_v40  ;;  %v949_v45 = vld [vmem:[#allocation8 + $0x14] sm:$0xf]  ;;  %v974_v23 = vld [vmem:[#allocation10 + $0x58] sm:$0xff] }
 0x1c4   :  { %v227_v47 = vadd.f32 %v226_v44, %v225_v46  ;;  %v950_v44 = vld [vmem:[#allocation8 + $0x14] sm:$0xf0]  ;;  %v814_v46 = vld [vmem:[#allocation8 + $0x18] sm:$0xf0] }
 0x1c6   :  { %v229_v48 = vmul.f32 0.044715, %v227_v47  ;;  %v228_v54 = vmul.f32 0.5, %v227_v47  ;;  %468 = vmatpush.bf16.msra.mxu3 %v841_v27  ;;  %v972_v27 = vld [vmem:[#allocation10 + $0x48] sm:$0xff] }
 0x1c8   :  { %v230_v49 = vmul.f32 %v229_v48, %v227_v47  ;;  %v804_v48 = vld [vmem:[#allocation8] sm:$0xf] }
 0x1ca   :  { %v231_v50 = vmul.f32 %v230_v49, %v227_v47  ;;  %469 = vmatpush.bf16.msra.mxu3 %v833_v35  ;;  %v948_v49 = vld [vmem:[#allocation8 + $0x4] sm:$0xf0] }
 0x1cc   :  { %v232_v51 = vadd.f32 %v231_v50, %v227_v47  ;;  %v817_v47 = vor.u32 %v949_v45, %v814_v46 }
 0x1ce   :  { %v233_v52 = vmul.f32 0.7978846, %v232_v51  ;;  %470 = vmatpush.bf16.msra.mxu3 %v825_v42  ;;  %v947_v51 = vld [vmem:[#allocation8 + $0x4] sm:$0xf] }
 0x1d0   :  { %997 = vtanh.f32 %v233_v52  ;;  %v806_v52 = vld [vmem:[#allocation8 + $0x8] sm:$0xf0] }
 0x1d2   :  { %471 = vmatpush.bf16.msra.mxu3 %v817_v47 }
 0x1d6   :  { %v998_v53 = vpop.eup %997 }
 0x1d7   :  { %v235_v55 = vadd.f32 1.0, %v998_v53 }
 0x1d9   :  { %v236_v56 = vmul.f32 %v235_v55, %v228_v54  ;;  %v805_v54 = vor.u32 %v948_v49, %v804_v48 }
 0x1db   :  { %v237_v57 = vpack.c.bf16 %v236_v56, %v236_v56  ;;  %v809_v56 = vor.u32 %v947_v51, %v806_v52 }
 0x1dd   :  { %311 = vmatmul.bf16.vlgmr.msra.gmra.mxu1 %v237_v57  ;;  %472 = vmatpush.bf16.msra.mxu3 %v809_v56 }
 0x25a   :  { %v312_v59 = vpop.f32.mrf.mxu1 }
 0x25b   :  { %v313_v60 = vadd.f32 %v312_v59, %v254_v58 }
 0x25d   :  { %316 = vadd.xlane.f32.xlu1 %v313_v60 }
 0x262   :  { %v314_v61 = vpop.f32.mrf.mxu1 }
 0x263   :  { %v978_v61 = vld [vmem:[#allocation10 + $0x78] sm:$0xff] }
 0x264   :  { %640 = vmatpush.bf16.msrb.mxu1 %v978_v61 }
 0x268   :  { %641 = vmatpush.bf16.msrb.mxu1 %v977_v2 }
 0x26c   :  { %642 = vmatpush.bf16.msrb.mxu1 %v976_v19 }
 0x270   :  { %643 = vmatpush.bf16.msrb.mxu1 %v975_v21 }
 0x274   :  { %644 = vmatpush.bf16.msrb.mxu1 %v974_v23 }
 0x278   :  { %645 = vmatpush.bf16.msrb.mxu1 %v973_v25 }
 0x27c   :  { %646 = vmatpush.bf16.msrb.mxu1 %v972_v27 }
 0x280   :  { %647 = vmatpush.bf16.msrb.mxu1 %v971_v29 }
 0x2d0   :  { %v317_v62 = vpop.xlane.xlu1 %316 }
 0x2d1   :  { %v318_v63 = vmul.f32 %v317_v62, %v1277_v20  ;;  %v336_v62 = vperm.slane %v1274_v9, 4 }
 0x2d3   :  { %v1285_v0 = vsub.f32 %v313_v60, %v318_v63  ;;  %v970_v60 = vld [vmem:[#allocation10 + $0x38] sm:$0xff] }
 0x2d4   :  { %627 = vmatpush.bf16.msrb.mxu0 %v970_v60  ;;  %v530_v60 = vperm.slane %v1274_v9, 6 }
 0x2d5   :  { %v320_v1 = vmul.f32 %v1285_v0, %v1285_v0 }
 0x2d7   :  { %321 = vadd.xlane.f32.xlu1 %v320_v1  ;;  %v969_v1 = vld [vmem:[#allocation10 + $0x30] sm:$0xff] }
 0x2d8   :  { %628 = vmatpush.bf16.msrb.mxu0 %v969_v1 }
 0x2dc   :  { %629 = vmatpush.bf16.msrb.mxu0 %v968_v18 }
 0x34a   :  { %v322_v32 = vpop.xlane.xlu1 %321 }
 0x34b   :  { %v323_v33 = vmul.f32 %v322_v32, %v1277_v20  ;;  %v813_v20 = vor.u32 %v950_v44, %v812_v43  ;;  %v369_v32 = vperm.slane %v366_v30, 1 }
 0x34d   :  { %v324_v38 = vadd.f32 1e-05, %v323_v33  ;;  %458 = vmatpush.bf16.msra.mxu2 %v813_v20 }
 0x34f   :  { %999 = vrsqrt.f32 %v324_v38  ;;  %vm331_vm5 = vweird.f32 %v324_v38 }
 0x351   :  { %459 = vmatpush.bf16.msra.mxu2 %v805_v54 }
 0x355   :  { %v1000_v50 = vpop.eup %999 }
 0x356   :  { %v326_v53 = vmul.f32 %v1000_v50, %v324_v38  ;;  %vm332_vm4 = vweird.f32 %v1000_v50 }
 0x357   :  { %vm333_vm6 = vmor %vm331_vm5, %vm332_vm4 }
 0x358   :  { %v327_v55 = vmul.f32 %v1000_v50, %v326_v53 }
 0x35a   :  { %v328_v57 = vmul.f32 0.5, %v327_v55 }
 0x35c   :  { %v329_v58 = vsub.f32 1.5, %v328_v57 }
 0x35e   :  { %v330_v59 = vmul.f32 %v1000_v50, %v329_v58  ;;  %v653_v58 = vlaneseq }
 0x360   :  { %v334_v63 = vsel %vm333_vm6, %v1000_v50, %v330_v59  ;;  %v1296_v59 = vand.u32 127, %v653_v58 }
 0x361   :  { %v335_v4 = vmul.f32 %v334_v63, %v1285_v0  ;;  %v967_v0 = vld [vmem:[#allocation10 + $0x20] sm:$0xff] }
 0x362   :  { %630 = vmatpush.bf16.msrb.mxu0 %v967_v0  ;;  %vm655_vm7 = vcmp.ge.s32.totalorder %v1296_v59, 3  ;;  %vm656_vm8 = vcmp.le.s32.totalorder %v1296_v59, 7  ;;  %vm677_vm15 = vcmp.eq.s32.totalorder %v1296_v59, 2  ;;  %vm713_vm5 = vcmp.lt.s32.totalorder %v1296_v59, 3 }
 0x363   :  { %v337_v5 = vmul.f32 %v336_v62, %v335_v4  ;;  %vm657_vm9 = vmand %vm655_vm7, %vm656_vm8  ;;  %vm715_vm6 = vcmp.eq.s32.totalorder %v1296_v59, 8 }
 0x365   :  { %v339_v6 = vadd.f32 %v338_v3, %v337_v5  ;;  %v706_v5 = vcvt.s32.f32 %v1296_v59 }
 0x366   :  { %631 = vmatpush.bf16.msrb.mxu0 %v966_v22 }
 0x367   :  { %v341_v7 = vmul.f32 0.044715, %v339_v6  ;;  %v340_v14 = vmul.f32 0.5, %v339_v6 }
 0x369   :  { %v342_v8 = vmul.f32 %v341_v7, %v339_v6 }
 0x36a   :  { %632 = vmatpush.bf16.msrb.mxu0 %v965_v24 }
 0x36b   :  { %v343_v10 = vmul.f32 %v342_v8, %v339_v6 }
 0x36d   :  { %v344_v11 = vadd.f32 %v343_v10, %v339_v6  ;;  %v930_v6 = vadd.f32 -3.0, %v706_v5 }
 0x36e   :  { %633 = vmatpush.bf16.msrb.mxu0 %v964_v26 }
 0x36f   :  { %v345_v12 = vmul.f32 0.7978846, %v344_v11 }
 0x371   :  { %1001 = vtanh.f32 %v345_v12 }
 0x372   :  { %634 = vmatpush.bf16.msrb.mxu0 %v963_v28 }
 0x377   :  { %v1002_v13 = vpop.eup %1001 }
 0x378   :  { %v347_v15 = vadd.f32 1.0, %v1002_v13 }
 0x37a   :  { %v348_v16 = vmul.f32 %v347_v15, %v340_v14 }
 0x37c   :  { %v349_v17 = vpack.c.bf16 %v348_v16, %v348_v16 }
 0x37e   :  { %460 = vmatmul.bf16.vlgmr.msra.gmra.mxu2 %v349_v17  ;;  %473 = vmatmul.bf16.vlgmr.msra.gmra.mxu3 %v349_v17 }
 0x401   :  { %v461_v33 = vpop.f32.mrf.mxu2  ;;  %v474_v34 = vpop.f32.mrf.mxu3 }
 0x402   :  { %v462_v35 = vadd.f32 %v461_v33, %v368_v31  ;;  %v475_v36 = vadd.f32 %v474_v34, %v369_v32  ;;  %v1204_v32 = vmov 80.0  }
 0x403   :  { %v678_v33 = vsel %vm677_vm15, 90.0, %v1204_v32 }
 0x404   :  { %v480_v37 = vmul.f32 0.044715, %v462_v35  ;;  %v481_v38 = vmul.f32 0.044715, %v475_v36  ;;  %v478_v50 = vmul.f32 0.5, %v462_v35  ;;  %v479_v52 = vmul.f32 0.5, %v475_v36 }
 0x406   :  { %v482_v39 = vmul.f32 %v480_v37, %v462_v35  ;;  %v483_v40 = vmul.f32 %v481_v38, %v475_v36 }
 0x408   :  { %v484_v41 = vmul.f32 %v482_v39, %v462_v35  ;;  %v485_v42 = vmul.f32 %v483_v40, %v475_v36  ;;  %v1205_v39 = vmov 20.0  }
 0x409   :  { %v463_v43 = vpop.f32.mrf.mxu2  ;;  %v476_v44 = vpop.f32.mrf.mxu3  ;;  %v679_v40 = vsel %vm677_vm15, 10.0, %v1205_v39 }
 0x40a   :  { %v486_v45 = vadd.f32 %v484_v41, %v462_v35  ;;  %v487_v46 = vadd.f32 %v485_v42, %v475_v36 }
 0x40c   :  { %v488_v20 = vmul.f32 0.7978846, %v486_v45  ;;  %v489_v47 = vmul.f32 0.7978846, %v487_v46 }
 0x40e   :  { %1003 = vtanh.f32 %v488_v20 }
 0x40f   :  { %1005 = vtanh.f32 %v489_v47 }
 0x414   :  { %v1004_v48 = vpop.eup %1003 }
 0x415   :  { %v1006_v49 = vpop.eup %1005  ;;  %v492_v51 = vadd.f32 1.0, %v1004_v48 }
 0x416   :  { %v493_v53 = vadd.f32 1.0, %v1006_v49 }
 0x417   :  { %v494_v54 = vmul.f32 %v492_v51, %v478_v50 }
 0x418   :  { %v495_v55 = vmul.f32 %v493_v53, %v479_v52 }
 0x419   :  { %v496_v56 = vpack.c.bf16 %v494_v54, %v494_v54 }
 0x41a   :  { %v497_v57 = vpack.c.bf16 %v495_v55, %v495_v55 }
 0x41b   :  { %635 = vmatmul.bf16.vlgmr.msrb.gmra.mxu0 %v496_v56 }
 0x41c   :  { %648 = vmatmul.bf16.vlgmr.msrb.gmra.mxu1 %v497_v57 }
 0x498   :  { %v636_v61 = vpop.f32.mrf.mxu0 }
 0x499   :  { %v637_v62 = vadd.f32 %v636_v61, %v530_v60  ;;  %v649_v63 = vpop.f32.mrf.mxu1 }
 0x49b   :  { %v650_v1 = vadd.f32 %v649_v63, %v637_v62 }
 0x49d   :  { %v682_v2 = vsel %vm657_vm9, %v650_v1, -1e+30  ;;  %v658_v13 = vsub.f32 0.0, %v650_v1 }
 0x49e   :  { %683 = vmax.xlane.f32.xlu2 %v682_v2 }
 0x49f   :  { %v659_v14 = vmul.f32 1.442695, %v658_v13 }
 0x4a0   :  { %v638_v3 = vpop.f32.mrf.mxu0 }
 0x4a1   :  { %v651_v4 = vpop.f32.mrf.mxu1 }
 0x511   :  { %v684_v7 = vpop.xlane.xlu2 %683 }
 0x512   :  { %v685_v8 = vsub.f32 %v650_v1, %v684_v7  ;;  %vm707_vm10 = vcmp.ge.f32.partialorder %v650_v1, %v684_v7 }
 0x513   :  { %vm708_vm11 = vmand %vm657_vm9, %vm707_vm10 }
 0x514   :  { %v686_v9 = vsel %vm657_vm9, %v685_v8, -1e+30  ;;  %v710_v10 = vsel %vm708_vm11, %v930_v6, 128.0 }
 0x515   :  { %v687_v11 = vmul.f32 1.442695, %v686_v9  ;;  %711 = vmin.xlane.f32.xlu0 %v710_v10 }
 0x517   :  { %1007 = vpow2.f32 %v687_v11 }
 0x518   :  { %1009 = vpow2.f32 %v659_v14 }
 0x51d   :  { %v1008_v12 = vpop.eup %1007 }
 0x51e   :  { %689 = vadd.xlane.f32.xlu2 %v1008_v12  ;;  %v1010_v15 = vpop.eup %1009 }
 0x51f   :  { %v661_v16 = vadd.f32 1.0, %v1010_v15 }
 0x521   :  { %1011 = vrcp.f32 %v661_v16  ;;  %v673_v23 = vand.u32 2147483648, %v661_v16  ;;  %vm667_vm13 = vweird.f32 %v661_v16  ;;  %v671_v24 = vand.u32 2147483647, %v661_v16 }
 0x523   :  { %v674_v28 = vor.u32 1.1754944e-38, %v673_v23  ;;  %vm672_vm0 = vcmp.eq.f32.partialorder %v671_v24, 8.507059e+37 }
 0x527   :  { %v1012_v17 = vpop.eup %1011 }
 0x528   :  { %v663_v18 = vmul.f32 %v1012_v17, %v661_v16  ;;  %vm668_vm12 = vweird.f32 %v1012_v17 }
 0x529   :  { %vm669_vm14 = vmor %vm667_vm13, %vm668_vm12 }
 0x52a   :  { %v664_v19 = vsub.f32 1.0, %v663_v18 }
 0x52c   :  { %v665_v21 = vmul.f32 %v1012_v17, %v664_v19 }
 0x52e   :  { %v666_v22 = vadd.f32 %v1012_v17, %v665_v21 }
 0x530   :  { %v670_v27 = vsel %vm669_vm14, %v1012_v17, %v666_v22 }
 0x531   :  { %v675_v31 = vsel %vm672_vm0, %v674_v28, %v670_v27 }
 0x532   :  { %v680_v37 = vmul.f32 %v678_v33, %v675_v31 }
 0x534   :  { %v681_v44 = vadd.f32 %v680_v37, %v679_v40 }
 0x588   :  { %v712_v45 = vpop.xlane.xlu0 %711 }
 0x591   :  { %v690_v0 = vpop.xlane.xlu2 %689 }
 0x592   :  { %1013 = vrcp.f32 %v690_v0  ;;  %v702_v30 = vand.u32 2147483648, %v690_v0  ;;  %v700_v35 = vand.u32 2147483647, %v690_v0  ;;  %vm696_vm2 = vweird.f32 %v690_v0 }
 0x594   :  { %v703_v38 = vor.u32 1.1754944e-38, %v702_v30  ;;  %vm701_vm4 = vcmp.eq.f32.partialorder %v700_v35, 8.507059e+37 }
 0x598   :  { %v1014_v25 = vpop.eup %1013 }
 0x599   :  { %v692_v26 = vmul.f32 %v1014_v25, %v690_v0  ;;  %vm697_vm1 = vweird.f32 %v1014_v25 }
 0x59a   :  { %vm698_vm3 = vmor %vm696_vm2, %vm697_vm1 }
 0x59b   :  { %v693_v29 = vsub.f32 1.0, %v692_v26 }
 0x59d   :  { %v694_v34 = vmul.f32 %v1014_v25, %v693_v29 }
 0x59f   :  { %v695_v36 = vadd.f32 %v1014_v25, %v694_v34 }
 0x5a1   :  { %v699_v41 = vsel %vm698_vm3, %v1014_v25, %v695_v36 }
 0x5a2   :  { %v704_v42 = vsel %vm701_vm4, %v703_v38, %v699_v41 }
 0x5a3   :  { %v705_v43 = vmul.f32 %v1008_v12, %v704_v42 }
 0x5a5   :  { %v714_v46 = vsel %vm713_vm5, %v681_v44, %v705_v43 }
 0x5a6   :  { %v716_v20 = vsel %vm715_vm6, %v712_v45, %v714_v46 }
 0x5a7   :  { %717 = vst [vmem:[#allocation13] sm:$0xff] %v716_v20 }
 0x5a8   :  { %728 = dma.vmem_to_hbm [thread:$0]  %s724_s8, 128, %s726_s11, [#allocation4]  }
 0x5a9   :  { %1191 = dma.done.wait [#allocation4], 128  }
 0x5aa   :  { %1192 = vsyncadd [#allocation4], 4294967168 }
 0x5ab   :  { %733 = vsyncpa [#allocation3], 1 }
 0x5ac   :  { %734 = vsyncpa [#allocation6], 1 }
 0x5ad   :  { %735 = vsyncpa [#allocation9], 1 }
 0x5ae   :  { %736 = vsyncpa [#allocation12], 1 }
 0x5af   :  { %737 = vsyncpa [#allocation4], 1 }

</bundles_post_ra>
